<compile_context>
chip_gen: v7x
topology: tpu7x:2x2x1
jax: 0.10.0
libtpu: 0.0.40
codegen_flags: <defaults>
</compile_context>

<pallas_src>
import jax
import jax.numpy as jnp
from jax import lax
from jax.experimental import pallas as pl
from jax.experimental.pallas import tpu as pltpu


def attention_kernel(packed_ref, emb_ref, wh_ref, wv_ref, wp_ref, wx_ref,
                     w_h_ref, w_a_ref, out_ref):
    # Per-batch blocks:
    #   packed_ref : (S, H)    emb_ref : (1, A)
    #   wh/wp/wx   : (H, H)    wv      : (A, A)
    #   w_h_ref    : (1, H)    w_a_ref : (A, 1)
    #   out_ref    : (1, H)
    S = packed_ref.shape[0]
    packed = packed_ref[...]                                               # (S, H)

    # Hidden path: a single 2-D MXU matmul, contracting over the weight's last dim
    # (no transpose, no reshape).
    lin_h = lax.dot_general(packed, wh_ref[...], (((1,), (1,)), ((), ())),
                            preferred_element_type=jnp.float32)            # (S, H)
    # Scores stay sublane-major (S on sublanes): lane reduce over H.
    sc_h = jnp.sum(jnp.tanh(lin_h) * w_h_ref[...], axis=1, keepdims=True)  # (S, 1)

    # Aspect path on the VPU (tiny): lin_a[a] = sum_j W_v[a, j] * emb[j].
    lin_a = jnp.sum(wv_ref[...] * emb_ref[...], axis=1, keepdims=True)     # (A, 1)
    sc_a = jnp.sum(jnp.tanh(lin_a) * w_a_ref[...], axis=0, keepdims=True)  # (1, 1)

    scores = sc_h + sc_a                                                   # (S, 1)

    # Softmax over S (sublane axis); normalization is deferred until after the weighted sum.
    m = jnp.max(scores, axis=0, keepdims=True)                             # (1, 1)
    e = jnp.exp(scores - m)                                                # (S, 1)
    denom = jnp.sum(e, axis=0, keepdims=True)                              # (1, 1)

    # r = softmax(scores) @ packed, done as a VPU weighted sublane sum (no M=1 MXU matmul),
    # normalized afterwards with an EUP approximate reciprocal of the (1,1) denominator.
    r = jnp.sum(e * packed, axis=0, keepdims=True) \
        * pl.reciprocal(denom, approx=True)                                # (1, H)

    h_n = packed_ref[pl.ds(S - 1, 1), :]                                   # (1, H) last hidden state

    # Tail: two 2-D MXU matmuls summed (no lane concat).
    lin_r = lax.dot_general(r, wp_ref[...], (((1,), (1,)), ((), ())),
                            preferred_element_type=jnp.float32)            # (1, H)
    lin_hn = lax.dot_general(h_n, wx_ref[...], (((1,), (1,)), ((), ())),
                             preferred_element_type=jnp.float32)           # (1, H)
    out_ref[...] = jnp.tanh(lin_r + lin_hn)                                # (1, H)


@jax.jit
def attention_forward(packed, emb, W_h, W_v, W_p, W_x, w):
    """packed: (B,S,H), emb: (B,A), W_h/W_p/W_x: (H,H), W_v: (A,A), w: (1, H+A) -> (B, H)."""
    B, S, H = packed.shape
    A = emb.shape[1]

    # One-time (fused-under-jit) parameter / input prep. No transposes of weight matrices:
    # the kernel contracts over each weight's last dim.
    emb3 = emb.reshape(B, 1, A)            # per-batch (1, A) blocks
    w_h = w[:, :H]                         # (1, H): broadcasts over (S, H)
    w_a = w[:, H:].reshape(A, 1)           # (A, 1): sublane-major aspect weights

    out3 = pl.pallas_call(
        attention_kernel,
        out_shape=jax.ShapeDtypeStruct((B, 1, H), jnp.float32),
        grid_spec=pltpu.PrefetchScalarGridSpec(
            num_scalar_prefetch=0,
            grid=(B,),
            in_specs=[
                pl.BlockSpec((None, S, H), lambda b: (b, 0, 0)),   # packed, per-batch (S, H)
                pl.BlockSpec((None, 1, A), lambda b: (b, 0, 0)),   # aspects, per-batch (1, A)
                pl.BlockSpec((H, H), lambda b: (0, 0)),            # W_h (VMEM-resident)
                pl.BlockSpec((A, A), lambda b: (0, 0)),            # W_v (VMEM-resident)
                pl.BlockSpec((H, H), lambda b: (0, 0)),            # W_p (VMEM-resident)
                pl.BlockSpec((H, H), lambda b: (0, 0)),            # W_x (VMEM-resident)
                pl.BlockSpec((1, H), lambda b: (0, 0)),            # w[:, :H]
                pl.BlockSpec((A, 1), lambda b: (0, 0)),            # w[:, H:] as a column
            ],
            out_specs=pl.BlockSpec((None, 1, H), lambda b: (b, 0, 0)),
        ),
        compiler_params=pltpu.CompilerParams(
            dimension_semantics=("parallel",)),   # v7x: each TC takes half the batch
    )(packed, emb3, W_h, W_v, W_p, W_x, w_h, w_a)
    return out3.reshape(B, H)


def attention_reference(packed, emb, W_h, W_v, W_p, W_x, w):
    """Direct (pure-JAX) translation of the PyTorch forward for validation."""
    B, S, H = packed.shape
    A = emb.shape[1]
    lin_h = jnp.einsum('hk,bsk->bhs', W_h, packed)                 # (B, H, S)
    lin_a = jnp.einsum('ak,bk->ba', W_v, emb)                      # (B, A)
    rep = jnp.broadcast_to(lin_a[:, :, None], (B, A, S))           # (B, A, S)
    M = jnp.tanh(jnp.concatenate([lin_h, rep], axis=1))            # (B, H+A, S)
    input_mul = jnp.einsum('c,bcs->bs', w[0], M)                   # (B, S)
    alpha = jax.nn.softmax(input_mul, axis=-1)                     # (B, S)
    r = jnp.einsum('bs,bsh->bh', alpha, packed)                    # (B, H)
    lin_r = jnp.einsum('hk,bk->bh', W_p, r)                        # (B, H)
    lin_hn = jnp.einsum('hk,bk->bh', W_x, packed[:, -1, :])        # (B, H)
    return jnp.tanh(lin_r + lin_hn)                                # (B, H)


def xavier_normal(key, shape):
    fan_out, fan_in = shape[0], shape[1]
    std = (2.0 / (fan_in + fan_out)) ** 0.5
    return std * jax.random.normal(key, shape, dtype=jnp.float32)


if __name__ == "__main__":
    B, S, H, A = 2, 8, 32, 16   # batch, seq, hidden_dim, aspect_embedding_dim

    key = jax.random.PRNGKey(0)
    k = jax.random.split(key, 8)

    # deterministic parameter init (mirrors xavier_normal_ shapes)
    W_h = xavier_normal(k[0], (H, H))
    W_v = xavier_normal(k[1], (A, A))
    W_p = xavier_normal(k[2], (H, H))
    W_x = xavier_normal(k[3], (H, H))
    w = xavier_normal(k[4], (1, H + A))

    # deterministic example inputs
    packed_hidden_vectors = jax.random.normal(k[5], (B, S, H), dtype=jnp.float32)
    embedded_aspects = jax.random.normal(k[6], (B, A), dtype=jnp.float32)
    text = jax.random.normal(k[7], (B, S), dtype=jnp.float32)  # unused, parity with torch forward

    out = attention_forward(packed_hidden_vectors, embedded_aspects,
                            W_h, W_v, W_p, W_x, w)
    out = jax.block_until_ready(out)

    ref = attention_reference(packed_hidden_vectors, embedded_aspects,
                              W_h, W_v, W_p, W_x, w)
    assert out.shape == (B, H)
    # Tolerance loosened (2e-3) because the softmax denominator uses the EUP approximate
    # reciprocal; still far tighter than any meaningful model-level difference.
    assert jnp.allclose(out, ref, atol=2e-3, rtol=2e-3), "mismatch vs. reference"

    print("KERNEL_OK")
</pallas_src>

<mosaic_0001>
module attributes {stable_mosaic.version = 11 : i64} {
  func.func @attention_kernel(%arg0: i32, %arg1: memref<1x8x32xf32, #tpu.memory_space<vmem>>, %arg2: memref<1x1x16xf32, #tpu.memory_space<vmem>>, %arg3: memref<32x32xf32, #tpu.memory_space<vmem>>, %arg4: memref<16x16xf32, #tpu.memory_space<vmem>>, %arg5: memref<32x32xf32, #tpu.memory_space<vmem>>, %arg6: memref<32x32xf32, #tpu.memory_space<vmem>>, %arg7: memref<1x32xf32, #tpu.memory_space<vmem>>, %arg8: memref<16x1xf32, #tpu.memory_space<vmem>>, %arg9: memref<1x1x32xf32, #tpu.memory_space<vmem>>) attributes {dimension_semantics = [#tpu.dimension_semantics<parallel>], iteration_bounds = array<i64: 2>, scalar_prefetch = 0 : i64, scratch_operands = 0 : i64, tpu.core_type = #tpu.core_type<tc>, window_params = [{transform_indices = @transform_0, window_bounds = array<i64: 1, 8, 32>}, {transform_indices = @transform_1, window_bounds = array<i64: 1, 1, 16>}, {pipeline_mode = #tpu.pipeline_mode<synchronous>, transform_indices = @transform_2, window_bounds = array<i64: 32, 32>}, {pipeline_mode = #tpu.pipeline_mode<synchronous>, transform_indices = @transform_3, window_bounds = array<i64: 16, 16>}, {pipeline_mode = #tpu.pipeline_mode<synchronous>, transform_indices = @transform_4, window_bounds = array<i64: 32, 32>}, {pipeline_mode = #tpu.pipeline_mode<synchronous>, transform_indices = @transform_5, window_bounds = array<i64: 32, 32>}, {pipeline_mode = #tpu.pipeline_mode<synchronous>, transform_indices = @transform_6, window_bounds = array<i64: 1, 32>}, {pipeline_mode = #tpu.pipeline_mode<synchronous>, transform_indices = @transform_7, window_bounds = array<i64: 16, 1>}, {transform_indices = @transform_8, window_bounds = array<i64: 1, 1, 32>}]} {
    %c0 = arith.constant 0 : index
    %c0_0 = arith.constant 0 : index
    %c0_1 = arith.constant 0 : index
    %0 = vector.load %arg1[%c0, %c0_0, %c0_1] : memref<1x8x32xf32, #tpu.memory_space<vmem>>, vector<1x8x32xf32>
    %1 = vector.shape_cast %0 : vector<1x8x32xf32> to vector<8x32xf32>
    %c0_2 = arith.constant 0 : index
    %c0_3 = arith.constant 0 : index
    %2 = vector.load %arg3[%c0_2, %c0_3] : memref<32x32xf32, #tpu.memory_space<vmem>>, vector<32x32xf32>
    %cst = arith.constant dense<0.000000e+00> : vector<8x32xf32>
    %3 = tpu.matmul %1, %2, %cst {dimension_numbers = #tpu.dot_dimension_numbers<[1], [1], [0], [0], [0, 0, 1, 0], [], []>} : vector<8x32xf32>, vector<32x32xf32>, vector<8x32xf32> -> vector<8x32xf32>
    %4 = math.tanh %3 : vector<8x32xf32>
    %c0_4 = arith.constant 0 : index
    %c0_5 = arith.constant 0 : index
    %5 = vector.load %arg7[%c0_4, %c0_5] : memref<1x32xf32, #tpu.memory_space<vmem>>, vector<1x32xf32>
    %6 = vector.broadcast %5 : vector<1x32xf32> to vector<8x32xf32>
    %7 = arith.mulf %4, %6 : vector<8x32xf32>
    %cst_6 = arith.constant dense<0.000000e+00> : vector<8xf32>
    %8 = vector.multi_reduction <add>, %7, %cst_6 [1] : vector<8x32xf32> to vector<8xf32>
    %9 = vector.shape_cast %8 : vector<8xf32> to vector<8x1xf32>
    %c0_7 = arith.constant 0 : index
    %c0_8 = arith.constant 0 : index
    %10 = vector.load %arg4[%c0_7, %c0_8] : memref<16x16xf32, #tpu.memory_space<vmem>>, vector<16x16xf32>
    %c0_9 = arith.constant 0 : index
    %c0_10 = arith.constant 0 : index
    %c0_11 = arith.constant 0 : index
    %11 = vector.load %arg2[%c0_9, %c0_10, %c0_11] : memref<1x1x16xf32, #tpu.memory_space<vmem>>, vector<1x1x16xf32>
    %12 = vector.shape_cast %11 : vector<1x1x16xf32> to vector<1x16xf32>
    %13 = vector.broadcast %12 : vector<1x16xf32> to vector<16x16xf32>
    %14 = arith.mulf %10, %13 : vector<16x16xf32>
    %cst_12 = arith.constant dense<0.000000e+00> : vector<16xf32>
    %15 = vector.multi_reduction <add>, %14, %cst_12 [1] : vector<16x16xf32> to vector<16xf32>
    %16 = vector.shape_cast %15 : vector<16xf32> to vector<16x1xf32>
    %17 = math.tanh %16 : vector<16x1xf32>
    %c0_13 = arith.constant 0 : index
    %c0_14 = arith.constant 0 : index
    %18 = vector.load %arg8[%c0_13, %c0_14] : memref<16x1xf32, #tpu.memory_space<vmem>>, vector<16x1xf32>
    %19 = arith.mulf %17, %18 : vector<16x1xf32>
    %cst_15 = arith.constant dense<0.000000e+00> : vector<1xf32>
    %20 = vector.multi_reduction <add>, %19, %cst_15 [0] : vector<16x1xf32> to vector<1xf32>
    %21 = vector.shape_cast %20 : vector<1xf32> to vector<1x1xf32>
    %22 = vector.broadcast %21 : vector<1x1xf32> to vector<8x1xf32>
    %23 = arith.addf %9, %22 : vector<8x1xf32>
    %cst_16 = arith.constant dense<0xFF800000> : vector<1xf32>
    %24 = vector.multi_reduction <maximumf>, %23, %cst_16 [0] : vector<8x1xf32> to vector<1xf32>
    %25 = vector.shape_cast %24 : vector<1xf32> to vector<1x1xf32>
    %26 = vector.broadcast %25 : vector<1x1xf32> to vector<8x1xf32>
    %27 = arith.subf %23, %26 : vector<8x1xf32>
    %28 = math.exp %27 : vector<8x1xf32>
    %cst_17 = arith.constant dense<0.000000e+00> : vector<1xf32>
    %29 = vector.multi_reduction <add>, %28, %cst_17 [0] : vector<8x1xf32> to vector<1xf32>
    %30 = vector.shape_cast %29 : vector<1xf32> to vector<1x1xf32>
    %31 = vector.broadcast %28 : vector<8x1xf32> to vector<8x32xf32>
    %32 = arith.mulf %31, %1 : vector<8x32xf32>
    %cst_18 = arith.constant dense<0.000000e+00> : vector<32xf32>
    %33 = vector.multi_reduction <add>, %32, %cst_18 [0] : vector<8x32xf32> to vector<32xf32>
    %34 = vector.shape_cast %33 : vector<32xf32> to vector<1x32xf32>
    %35 = tpu.reciprocal %30 {approx = true} : vector<1x1xf32> -> vector<1x1xf32>
    %36 = vector.broadcast %35 : vector<1x1xf32> to vector<1x32xf32>
    %37 = arith.mulf %34, %36 : vector<1x32xf32>
    %c0_19 = arith.constant 0 : index
    %c7 = arith.constant 7 : index
    %c0_20 = arith.constant 0 : index
    %38 = vector.load %arg1[%c0_19, %c7, %c0_20] : memref<1x8x32xf32, #tpu.memory_space<vmem>>, vector<1x1x32xf32>
    %39 = vector.shape_cast %38 : vector<1x1x32xf32> to vector<1x32xf32>
    %c0_21 = arith.constant 0 : index
    %c0_22 = arith.constant 0 : index
    %40 = vector.load %arg5[%c0_21, %c0_22] : memref<32x32xf32, #tpu.memory_space<vmem>>, vector<32x32xf32>
    %cst_23 = arith.constant dense<0.000000e+00> : vector<1x32xf32>
    %41 = tpu.matmul %37, %40, %cst_23 {dimension_numbers = #tpu.dot_dimension_numbers<[1], [1], [0], [0], [0, 0, 1, 0], [], []>} : vector<1x32xf32>, vector<32x32xf32>, vector<1x32xf32> -> vector<1x32xf32>
    %c0_24 = arith.constant 0 : index
    %c0_25 = arith.constant 0 : index
    %42 = vector.load %arg6[%c0_24, %c0_25] : memref<32x32xf32, #tpu.memory_space<vmem>>, vector<32x32xf32>
    %cst_26 = arith.constant dense<0.000000e+00> : vector<1x32xf32>
    %43 = tpu.matmul %39, %42, %cst_26 {dimension_numbers = #tpu.dot_dimension_numbers<[1], [1], [0], [0], [0, 0, 1, 0], [], []>} : vector<1x32xf32>, vector<32x32xf32>, vector<1x32xf32> -> vector<1x32xf32>
    %44 = arith.addf %41, %43 : vector<1x32xf32>
    %45 = math.tanh %44 : vector<1x32xf32>
    %c0_27 = arith.constant 0 : index
    %c0_28 = arith.constant 0 : index
    %c0_29 = arith.constant 0 : index
    %46 = vector.load %arg9[%c0_27, %c0_28, %c0_29] : memref<1x1x32xf32, #tpu.memory_space<vmem>>, vector<1x1x32xf32>
    %47 = vector.shape_cast %46 : vector<1x1x32xf32> to vector<1x32xf32>
    %48 = vector.shape_cast %45 : vector<1x32xf32> to vector<1x1x32xf32>
    tpu.vector_store %arg9[%c0_27, %c0_28, %c0_29], %48 {strides = array<i32>} : memref<1x1x32xf32, #tpu.memory_space<vmem>>, vector<1x1x32xf32>,
    return
  }
  func.func @transform_0(%arg0: i32) -> (i32, i32, i32) {
    %c0_i32 = arith.constant 0 : i32
    %c0_i32_0 = arith.constant 0 : i32
    %c0_i32_1 = arith.constant 0 : i32
    return %arg0, %c0_i32, %c0_i32_0 : i32, i32, i32
  }
  func.func @transform_1(%arg0: i32) -> (i32, i32, i32) {
    %c0_i32 = arith.constant 0 : i32
    %c0_i32_0 = arith.constant 0 : i32
    %c0_i32_1 = arith.constant 0 : i32
    return %arg0, %c0_i32, %c0_i32_0 : i32, i32, i32
  }
  func.func @transform_2(%arg0: i32) -> (i32, i32) {
    %c0_i32 = arith.constant 0 : i32
    %c0_i32_0 = arith.constant 0 : i32
    %c0_i32_1 = arith.constant 0 : i32
    return %c0_i32, %c0_i32_0 : i32, i32
  }
  func.func @transform_3(%arg0: i32) -> (i32, i32) {
    %c0_i32 = arith.constant 0 : i32
    %c0_i32_0 = arith.constant 0 : i32
    %c0_i32_1 = arith.constant 0 : i32
    return %c0_i32, %c0_i32_0 : i32, i32
  }
  func.func @transform_4(%arg0: i32) -> (i32, i32) {
    %c0_i32 = arith.constant 0 : i32
    %c0_i32_0 = arith.constant 0 : i32
    %c0_i32_1 = arith.constant 0 : i32
    return %c0_i32, %c0_i32_0 : i32, i32
  }
  func.func @transform_5(%arg0: i32) -> (i32, i32) {
    %c0_i32 = arith.constant 0 : i32
    %c0_i32_0 = arith.constant 0 : i32
    %c0_i32_1 = arith.constant 0 : i32
    return %c0_i32, %c0_i32_0 : i32, i32
  }
  func.func @transform_6(%arg0: i32) -> (i32, i32) {
    %c0_i32 = arith.constant 0 : i32
    %c0_i32_0 = arith.constant 0 : i32
    %c0_i32_1 = arith.constant 0 : i32
    return %c0_i32, %c0_i32_0 : i32, i32
  }
  func.func @transform_7(%arg0: i32) -> (i32, i32) {
    %c0_i32 = arith.constant 0 : i32
    %c0_i32_0 = arith.constant 0 : i32
    %c0_i32_1 = arith.constant 0 : i32
    return %c0_i32, %c0_i32_0 : i32, i32
  }
  func.func @transform_8(%arg0: i32) -> (i32, i32, i32) {
    %c0_i32 = arith.constant 0 : i32
    %c0_i32_0 = arith.constant 0 : i32
    %c0_i32_1 = arith.constant 0 : i32
    return %arg0, %c0_i32, %c0_i32_0 : i32, i32, i32
  }
}

</mosaic_0001>

<bundles_post_ra>
// kernel: attention_forward.1
= control target key start
LH: loop header
LB: loop body
LE: loop exit
PB: predicated region body
PF: predicated region fallthrough
CT: control target
= control target key end

     0   :  { %13 = vsyncpa [#allocation3], 0  ;;  %s1639_s0 = inlined_call_operand.hbm [shape: f32[2,8,32], index: 0, kind: input, shape index: {}]   ;;  %s1640_s1 = inlined_call_operand.vmem [shape: f32[2,1,16], index: 1, kind: input, shape index: {}]   ;;  %s1641_s2 = inlined_call_operand.vmem [shape: f32[32,32], index: 2, kind: input, shape index: {}]   ;;  %s1642_s3 = inlined_call_operand.hbm [shape: f32[16,16], index: 3, kind: input, shape index: {}]   ;;  %s1643_s4 = inlined_call_operand.hbm [shape: f32[32,32], index: 4, kind: input, shape index: {}]   ;;  %s1644_s5 = inlined_call_operand.hbm [shape: f32[32,32], index: 5, kind: input, shape index: {}]   ;;  %s1645_s6 = inlined_call_operand.vmem [shape: f32[1,32], index: 6, kind: input, shape index: {}]   ;;  %s1646_s7 = inlined_call_operand.vmem [shape: f32[16,1], index: 7, kind: input, shape index: {}]   ;;  %s1647_s8 = inlined_call_operand.hbm [shape: f32[2,1,32], index: 8, kind: output, shape index: {}]  }
   0x1   :  { %15 = vsyncpa [#allocation3 + $0x1], 0 }
   0x2   :  { %16 = vsyncpa [#allocation6], 0 }
   0x3   :  { %17 = vsyncpa [#allocation9], 0 }
   0x4   :  { %18 = vsyncpa [#allocation4], 0 }
   0x5   :  { %20 = vsyncpa [#allocation4 + $0x1], 0  ;;  %s1302_s27 = smov 0   ;;  %s1304_s28 = smov 0  }
   0x6   :  { %s1306_s29 = smov 0   ;;  %s1308_s30 = smov 0  }
   0x7 LB: > { %1653 = sst [smem:[#allocation15_spill]] %s1232_s27  ;;  %s1323_s9 = sadd.s32 4294967295, %s1244_s30   ;;  %s1244_s30 = sphi %s1308_s30, %s1678_s30   ;;  %s1240_s29 = sphi %s1306_s29, %s1677_s29   ;;  %s1236_s28 = sphi %s1304_s28, %s1676_s28   ;;  %s1232_s27 = sphi %s1302_s27, %s1675_s27  }
   0x8   : > { %s852_s10 = sadd.s32 4294967294, %s1244_s30   ;;  %p46_p0 = scmp.ne.s32.totalorder %s1236_s28, %s1232_s27 }
   0x9   : > { %p1648_p1 = scmp.eq.s32.totalorder %s1323_s9, 0  ;;  %p228_p3 = scmp.eq.s32.totalorder %s852_s10, 1 }
   0xa   : > { %p853_p5 = scmp.ge.s32.totalorder %s1244_s30, 1  ;;  %p235_p7 = scmp.lt.s32.totalorder %s1244_s30, 3 }
   0xb   : > { %p1332_p4 = por %p1648_p1, %p46_p0  ;;  %p1337_p6 = por %p228_p3, %p46_p0 }
   0xc   : > { %p1342_p8 = pnand %p853_p5, %p235_p7  ;;  %s1246_s14 = smov [#allocation5]  }
   0xd   : > { %s1654_s11 = scalar_select %p1332_p4, 1, 0 }
   0xe   : > { %s1655_s12 = scalar_select %p1337_p6, 1, 0 }
   0xf   : > { %s1657_s13 = scalar_select %p1342_p8, 1, 0 }
  0x10   : > { %1656 = sst [smem:[#allocation16_spill]] %s1655_s12  ;;  %s250_s15 = sshll.u32 %s1246_s14, 4  ;;  %s1346_s15 = int_to_ptr.vmem [resolvable:$true] %s250_s15 }
  0x11   : > { %p975_p9 = pneg %p1342_p8  ;;  %s1247_s17 = smov [#allocation7]  }
  0x12   : > { %s263_s18 = sshll.u32 %s1247_s17, 4  ;;  %s1248_s19 = smov [#allocation8]   ;;  %s1357_s18 = int_to_ptr.vmem [resolvable:$true] %s263_s18 }
  0x13   : > { %p1353_p11 = pnand %p975_p9, %p1648_p1  ;;  %s1359_s20 = sshll.u32 %s1248_s19, 4  ;;  %s277_s20 = int_to_ptr.vmem [resolvable:$true] %s1359_s20 }
  0x14   : > { %s1056_s23 = scalar_lea.hbm %s1642_s3, 256 }
  0x15   : > { %p1057_p12 = scmp.ne.s32.totalorder %s1642_s3, %s1056_s23  ;;  %p1369_p13 = pneg %p1353_p11 }
  0x16   : > { %p1063_p5 = scmp.lt.u32.totalorder %s1056_s23, %s1642_s3 }
  0x17   : > { %p1059_p0 = pnand %p1369_p13, %p1057_p12 }
  0x19   : > { %p1060_p3 = pneg %p1059_p0 }
  0x1b   : > { %p1065_p7 = pnand %p1063_p5, %p1060_p3 }
  0x1d   : > { %1068 = shalt.err (!%p1065_p7)
}
  0x1e   : > { %s1069_s17 = scalar_lea.vmem %s1346_s15, 256  ;;  %p1077_p2 = scmp.lt.s32.totalorder %s1346_s15, %s1346_s15 }
  0x1f   : > { %p1070_p9 = scmp.ne.s32.totalorder %s1346_s15, %s1069_s17  ;;  %p1078_p6 = scmp.lt.s32.totalorder %s1069_s17, %s1069_s17 }
  0x21   : > { %p1072_p10 = pnand %p1070_p9, %p1369_p13  ;;  %p1079_p12 = por %p1078_p6, %p1077_p2 }
  0x23   : > { %p1073_p1 = pneg %p1072_p10 }
  0x25   : > { %p1080_p0 = pnand %p1079_p12, %p1073_p1 }
  0x27   : > { %1083 = shalt.err (!%p1080_p0)
}
  0x28   : > { %s1249_s19 = smov 128   ;;  %s1250_s21 = smov 8  }
  0x29   : > { %978 = dma.hbm_to_vmem [thread:$0]  (!%p1353_p11), %s1642_s3, 256, %s1346_s15, [#allocation6], %s1249_s19, %s1249_s19, %s1250_s21  }
  0x2a   : > { %s1084_s10 = scalar_lea.hbm %s1643_s4, 512 }
  0x2b   : > { %p1085_p1 = scmp.ne.s32.totalorder %s1643_s4, %s1084_s10  ;;  %p1091_p10 = scmp.lt.u32.totalorder %s1084_s10, %s1643_s4 }
  0x2d   : > { %p1087_p2 = pnand %p1085_p1, %p1369_p13 }
  0x2f   : > { %p1088_p6 = pneg %p1087_p2 }
  0x31   : > { %p1093_p3 = pnand %p1091_p10, %p1088_p6 }
  0x33   : > { %1096 = shalt.err (!%p1093_p3)
}
  0x34   : > { %s1097_s15 = scalar_lea.vmem %s1357_s18, 512  ;;  %p1105_p12 = scmp.lt.s32.totalorder %s1357_s18, %s1357_s18 }
  0x35   : > { %p1098_p5 = scmp.ne.s32.totalorder %s1357_s18, %s1097_s15  ;;  %p1106_p0 = scmp.lt.s32.totalorder %s1097_s15, %s1097_s15 }
  0x37   : > { %p1100_p7 = pnand %p1098_p5, %p1369_p13  ;;  %p1107_p1 = por %p1106_p0, %p1105_p12 }
  0x39   : > { %p1101_p9 = pneg %p1100_p7 }
  0x3b   : > { %p1108_p2 = pnand %p1107_p1, %p1101_p9 }
  0x3d   : > { %1111 = shalt.err (!%p1108_p2)
}
  0x3e   : > { %981 = dma.hbm_to_vmem [thread:$0]  (!%p1353_p11), %s1643_s4, 512, %s1357_s18, [#allocation6], %s1249_s19, %s1249_s19, %s1250_s21  }
  0x3f   : > { %s1112_s24 = scalar_lea.hbm %s1644_s5, 512 }
  0x40   : > { %p1113_p6 = scmp.ne.s32.totalorder %s1644_s5, %s1112_s24  ;;  %p1119_p5 = scmp.lt.u32.totalorder %s1112_s24, %s1644_s5 }
  0x42   : > { %p1115_p10 = pnand %p1113_p6, %p1369_p13 }
  0x44   : > { %p1116_p3 = pneg %p1115_p10 }
  0x46   : > { %p1121_p7 = pnand %p1119_p5, %p1116_p3 }
  0x48   : > { %1124 = shalt.err (!%p1121_p7)
}
  0x49   : > { %s1125_s15 = scalar_lea.vmem %s277_s20, 512  ;;  %p1133_p1 = scmp.lt.s32.totalorder %s277_s20, %s277_s20 }
  0x4a   : > { %p1126_p9 = scmp.ne.s32.totalorder %s277_s20, %s1125_s15  ;;  %p1134_p2 = scmp.lt.s32.totalorder %s1125_s15, %s1125_s15 }
  0x4c   : > { %p1128_p12 = pnand %p1126_p9, %p1369_p13  ;;  %p1135_p4 = por %p1134_p2, %p1133_p1 }
  0x4e   : > { %p1129_p0 = pneg %p1128_p12 }
  0x50   : > { %p1136_p8 = pnand %p1135_p4, %p1129_p0 }
  0x52   : > { %1139 = shalt.err (!%p1136_p8)
}
  0x53   : > { %984 = dma.hbm_to_vmem [thread:$0]  (!%p1353_p11), %s1644_s5, 512, %s277_s20, [#allocation9], %s1249_s19, %s1249_s19, %s1250_s21  }
  0x54   : > { %s1442_s26 = sadd.s32 1, %s1244_s30   ;;  %s33_s12 = sadd.s32 1, %s1240_s29 }
  0x55   : > { %s30_s16 = ssub.s32 %s1244_s30, %s1442_s26  ;;  %p40_p8 = scmp.ne.s32.totalorder %s1240_s29, %s1236_s28 }
  0x56   : > { %p31_p4 = scmp.eq.s32.totalorder %s30_s16, 0  ;;  %p41_p13 = scmp.eq.s32.totalorder %s1244_s30, 0 }
  0x57   : > { %p996_p6 = scmp.lt.s32.totalorder %s1244_s30, 2  ;;  %p1660_p3 = scmp.eq.s32.totalorder %s1323_s9, 1 }
  0x58   : > { %s1452_s22 = scalar_select %p31_p4, %s1240_s29, %s33_s12  }
  0x59   : > { %p42_p10 = por %p41_p13, %p40_p8  ;;  %p1456_p5 = por %p1660_p3, %p40_p8 }
  0x5a   : > { %s296_s24 = sand.u32 1, %s1240_s29   ;;  %s859_s25 = sshll.u32 %s1244_s30, 7 }
  0x5b   : > { %s858_s20 = sshll.u32 %s296_s24, 3  ;;  %s1465_s10 = scalar_lea.hbm %s1639_s0, %s859_s25 }
  0x5c   : > { %s300_s14 = scalar_lea.vmem [#allocation2], %s858_s20  ;;  %p1467_p11 = pnand %p996_p6, %p42_p10 }
  0x5d   : > { %s307_s17 = sshll.u32 %s300_s14, 4  ;;  %s297_s18 = scalar_lea.sflag [#allocation3], %s296_s24  ;;  %s1471_s17 = int_to_ptr.vmem [resolvable:$true] %s307_s17 }
  0x5e   : > { %s1140_s27 = scalar_lea.hbm %s1465_s10, 128  ;;  %p1142_p9 = pneg %p1467_p11 }
  0x5f   : > { %p1141_p7 = scmp.ne.s32.totalorder %s1465_s10, %s1140_s27  ;;  %s1145_s25 = scalar_lea.hbm %s1639_s0, 256 }
  0x60   : > { %p1146_p1 = scmp.lt.u32.totalorder %s1465_s10, %s1639_s0  ;;  %p1147_p2 = scmp.lt.u32.totalorder %s1145_s25, %s1140_s27 }
  0x61   : > { %p1143_p12 = pnand %p1142_p9, %p1141_p7  ;;  %p1149_p8 = scmp.lt.u32.totalorder %s1140_s27, %s1465_s10 }
  0x62   : > { %p1148_p4 = por %p1147_p2, %p1146_p1 }
  0x63   : > { %p1144_p0 = pneg %p1143_p12 }
  0x64   : > { %p1150_p13 = por %p1149_p8, %p1148_p4 }
  0x66   : > { %p1151_p6 = pnand %p1150_p13, %p1144_p0 }
  0x68   : > { %1154 = shalt.err (!%p1151_p6)
}
  0x69   : > { %s1155_s24 = scalar_lea.vmem %s1471_s17, 128  ;;  %s1251_s21 = smov [#allocation2]  }
  0x6a   : > { %p1156_p10 = scmp.ne.s32.totalorder %s1471_s17, %s1155_s24  ;;  %s1160_s14 = sshll.u32 %s1251_s21, 4  ;;  %s1161_s14 = int_to_ptr.vmem [resolvable:$false] %s1160_s14 }
  0x6b   : > { %s1162_s16 = scalar_lea.vmem %s1161_s14, 256  ;;  %p1163_p12 = scmp.lt.s32.totalorder %s1471_s17, %s1161_s14 }
  0x6c   : > { %p1158_p3 = pnand %p1156_p10, %p1142_p9  ;;  %p1164_p1 = scmp.lt.s32.totalorder %s1162_s16, %s1155_s24 }
  0x6e   : > { %p1159_p7 = pneg %p1158_p3  ;;  %p1165_p2 = por %p1164_p1, %p1163_p12 }
  0x70   : > { %p1166_p4 = pnand %p1165_p2, %p1159_p7 }
  0x72   : > { %1169 = shalt.err (!%p1166_p4)
}
  0x73   : > { %988 = dma.hbm_to_vmem [thread:$0]  (!%p1467_p11), %s1465_s10, 128, %s1471_s17, %s297_s18  }
  0x74   : > { %p1663_p0 = scmp.ne.s32.totalorder %s1657_s13, 0 }
  0x75   : > { %s1501_s27 = sand.u32 (!%p1663_p0), 1, %s1236_s28   ;;  %p1664_p9 = scmp.ne.s32.totalorder (!%p1663_p0), %s1654_s11, 0 }
  0x76   : > { %322 = sbr.rel (%p1663_p0) target bundleno = 941 (0x3ad), region = 52  ;;  %s861_s12 = sshll.u32 (!%p1663_p0), %s1501_s27, 3 }
  0x77   : > { %s325_s25 = scalar_lea.sflag (!%p1663_p0), [#allocation3], %s1501_s27  ;;  %s1505_s20 = scalar_lea.vmem (!%p1663_p0), [#allocation2], %s861_s12 }
  0x7d   : > { %1215 = dma.done.wait (%p1664_p9), %s325_s25, 128  }
  0x7e   : > { %1217 = vsyncadd (%p1664_p9), %s325_s25, 4294967168  ;;  %p1665_p11 = scmp.eq.s32.totalorder %s1323_s9, 0 }
  0x80   : > { %1219 = dma.done.wait (%p1665_p11), [#allocation6], 768   ;;  %p1666_p8 = pmov %p1665_p11 }
  0x82   : > { %1221 = vsyncadd (%p1666_p8), [#allocation6], 4294966528  ;;  %p1667_p13 = pmov %p1666_p8 }
  0x83   : > { %p1668_p6 = pmov %p1666_p8 }
  0x84   : > { %1223 = dma.done.wait (%p1667_p13), [#allocation9], 512  }
  0x85   : > { %1225 = vsyncadd (%p1668_p6), [#allocation9], 4294966784  ;;  %v1252_v0 = vmov 0.0|0.0   ;;  %vm1253_vm0 = vmmov 0   ;;  %v1254_v1 = vmov 0.0   ;;  %p375_p10 = scmp.lt.s32.totalorder %s1323_s9, 1 }
  0x86   : > { %933 = vmatprep.subr.bf16.mxu0 %v1252_v0  ;;  %908 = vmatprep.mubr.msk.f32.mxu0 %vm1253_vm0, %v1254_v1  ;;  %vm383_vm1 = vcmask 261120   ;;  %v379_v2 = vld [vmem:[%s1641_s2] sm:$0xff]  ;;  %v380_v3 = vld [vmem:[%s1641_s2 + $0x8] sm:$0xff]  ;;  %v481_v6 = vld [vmem:[#allocation5] sm:$0xff]  ;;  %vm492_vm3 = vcmask 130048   ;;  %v1255_v23 = vmov 0  }
  0x87   : > { %941 = vmatprep.subr.bf16.mxu1 %v1252_v0  ;;  %919 = vmatprep.mubr.msk.f32.mxu1 %vm1253_vm0, %v1254_v1  ;;  %s376_s11 = scalar_select %p375_p10, %s1323_s9, 1  ;;  %vm1538_vm2 = vmpackc.low %vm383_vm1, %vm383_vm1  ;;  %v934_v5 = vpack.c.bf16 %v380_v3, %v379_v2  ;;  %v482_v8 = vld [vmem:[#allocation5 + $0x8] sm:$0xff]  ;;  %v381_v11 = vld [vmem:[%s1641_s2 + $0x10] sm:$0xff]  ;;  %vm505_vm4 = vcmask 7168   ;;  %vm733_vm5 = vcmask 253952  }
  0x88   : > { %v382_v12 = vld [vmem:[%s1641_s2 + $0x18] sm:$0xff]  ;;  %v1554_v16 = vld [vmem:[%s1505_s20] sm:$0xff]  ;;  %1042 = vset.pattern.permute.xlu1 %v1255_v23  ;;  %1043 = vset.pattern.permute.xlu0 %v1255_v23  ;;  %v560_v57 = vld [vmem:[#allocation8 + $0x10] sm:$0xff]  ;;  %s374_s18 = scalar_lea.vmem [#allocation10], %s1501_s27  ;;  %s736_s16 = scalar_lea.sflag [#allocation4], %s1501_s27 }
  0x89   : > { %s377_s17 = scalar_lea.vmem %s1640_s1, %s376_s11  ;;  %936 = vmatpush3.bf16.xpose.msk.msra.mxu0 %vm1538_vm2, %v934_v5  ;;  %v938_v14 = vpack.c.bf16 %v382_v12, %v381_v11  ;;  %v870_v19 = vld [vmem:[%s1645_s6] ss:$0 sm:$0xff]  ;;  %v559_v25 = vld [vmem:[#allocation8 + $0x8] sm:$0xff]  ;;  %v561_v58 = vld [vmem:[#allocation8 + $0x18] sm:$0xff]  ;;  %s748_s19 = sshll.u32 %s374_s18, 4  ;;  %s1597_s19 = int_to_ptr.vmem [resolvable:$true] %s748_s19 }
  0x8a   : > { %v871_v7 = vld [vmem:[%s377_s17] ss:$0 sm:$0xff]  ;;  %937 = vmatprep.subr.bf16.mxu0 %v1252_v0  ;;  %v502_v32 = vld [vmem:[%s1646_s7 + $0x8] sm:$0xff]  ;;  %v946_v60 = vpack.c.bf16 %v561_v58, %v560_v57  ;;  %s1170_s12 = scalar_lea.vmem %s1597_s19, 16 }
  0x8b   : > { %v490_v9 = vmul.f32 %v871_v7, %v481_v6  ;;  %v491_v10 = vmul.f32 %v871_v7, %v482_v8  ;;  %v558_v24 = vld [vmem:[#allocation8] sm:$0xff]  ;;  %v555_v5 = vld [vmem:[#allocation7 + $0x8] sm:$0xff]  ;;  %p1171_p3 = scmp.ne.s32.totalorder %s1597_s19, %s1170_s12 }
  0x8c   : > { %v942_v26 = vpack.c.bf16 %v559_v25, %v558_v24  ;;  %v501_v31 = vld [vmem:[%s1646_s7] sm:$0xff] }
  0x8d   : > { %v493_v13 = vsel %vm492_vm3, %v490_v9, 0.0  ;;  %v496_v15 = vsel %vm492_vm3, %v491_v10, 0.0  ;;  %v553_v2 = vld [vmem:[%s1505_s20 + $0x7] sm:$0x1]  ;;  %v556_v9 = vld [vmem:[#allocation7 + $0x10] sm:$0xff]  ;;  %v557_v10 = vld [vmem:[#allocation7 + $0x18] sm:$0xff]  ;;  %p1172_p7 = pnand %p1171_p3, %p1456_p5 }
  0x8e   : > { %494 = vadd.xlane.f32.xlu0 %v493_v13  ;;  %944 = vmatpush3.bf16.xpose.msk.msra.mxu1 %vm1538_vm2, %v942_v26  ;;  %v554_v3 = vld [vmem:[#allocation7] sm:$0xff]  ;;  %v954_v11 = vpack.c.bf16 %v557_v10, %v556_v9  ;;  %s882_s20 = sshll.u32 %s1323_s9, 4  ;;  %s1256_s9 = smov [#allocation10]  }
  0x8f   : > { %945 = vmatprep.subr.bf16.mxu1 %v1252_v0  ;;  %v950_v6 = vpack.c.bf16 %v555_v5, %v554_v3  ;;  %s1595_s14 = scalar_lea.hbm %s1647_s8, %s882_s20  ;;  %p1173_p12 = pneg %p1172_p7 }
  0x90   : > { %s1174_s25 = sshll.u32 %s1256_s9, 4  ;;  %s1175_s25 = int_to_ptr.vmem [resolvable:$false] %s1174_s25 }
  0x91   : > { %940 = vmatpush3.bf16.xpose.msk.msra.mxu0 %vm1538_vm2, %v938_v14  ;;  %s1176_s11 = scalar_lea.vmem %s1175_s25, 32  ;;  %p1177_p1 = scmp.lt.s32.totalorder %s1597_s19, %s1175_s25 }
  0x92   : > { %497 = vadd.xlane.f32.xlu0 %v496_v15  ;;  %p1178_p2 = scmp.lt.s32.totalorder %s1176_s11, %s1170_s12 }
  0x94   : > { %p1179_p4 = por %p1178_p2, %p1177_p1 }
  0x96   : > { %948 = vmatpush3.bf16.xpose.msk.msra.mxu1 %vm1538_vm2, %v946_v60  ;;  %p1180_p0 = pnand %p1179_p4, %p1173_p12 }
  0x97   : > { %949 = vmatprep.subr.bf16.mxu1 %v1252_v0 }
  0x98   : > { %909 = vmatmul.mubr.msk.f32.vlgmr.msra.gmra.mrb[0].mxu0 %vm383_vm1, %v1554_v16 }
  0x9d   : > { %920 = vmatmul.mubr.msk.f32.vlgmr.msra.gmra.mrb[0].mxu1 %vm383_vm1, %v553_v2 }
  0x9e   : > { %952 = vmatpush3.bf16.xpose.msk.msra.mxu1 %vm1538_vm2, %v950_v6  ;;  %930 = vmatprep.mubr.msk.f32.mxu1 %vm1253_vm0, %v1254_v1 }
  0x9f   : > { %953 = vmatprep.subr.bf16.mxu1 %v1252_v0 }
  0xa6   : > { %956 = vmatpush3.bf16.xpose.msk.msra.mxu1 %vm1538_vm2, %v954_v11 }
 0x11b   : > { %v495_v27 = vpop.xlane.xlu0 %494 }
 0x11f   : > { %v498_v28 = vpop.xlane.xlu0 %497 }
 0x16b   : > { %v465_v17 = vpop.f32.mrb[0].mxu0 }
 0x16c   : > { %1044 = vtanh.f32 %v465_v17  ;;  %v910_v18 = vpop.f32.mrb[1].mxu0 }
 0x16d   : > { %1046 = vtanh.f32 %v495_v27 }
 0x16e   : > { %1048 = vtanh.f32 %v498_v28 }
 0x176   : > { %v1045_v20 = vpop.eup %1044 }
 0x177   : > { %v477_v21 = vmul.f32 %v1045_v20, %v870_v19  ;;  %v1047_v29 = vpop.eup %1046 }
 0x178   : > { %v1049_v30 = vpop.eup %1048  ;;  %v503_v33 = vmul.f32 %v1047_v29, %v501_v31 }
 0x179   : > { %v478_v22 = vsel %vm383_vm1, %v477_v21, 0.0  ;;  %v504_v34 = vmul.f32 %v1049_v30, %v502_v32 }
 0x17a   : > { %479 = vadd.xlane.f32.xlu1 %v478_v22  ;;  %v506_v35 = vsel %vm505_vm4, %v503_v33, 0.0 }
 0x17b   : > { %v507_v36 = vsel %vm505_vm4, %v504_v34, 0.0 }
 0x17c   : > { %v508_v37 = vadd.f32 %v507_v36, %v506_v35 }
 0x17e   : > { %v509_v38 = vrot.slane %v508_v37, 4 }
 0x180   : > { %v510_v39 = vadd.f32 %v509_v38, %v508_v37 }
 0x182   : > { %v511_v40 = vrot.slane %v510_v39, 2 }
 0x184   : > { %v512_v41 = vadd.f32 %v511_v40, %v510_v39 }
 0x186   : > { %v513_v42 = vrot.slane %v512_v41, 1 }
 0x188   : > { %v514_v43 = vadd.f32 %v513_v42, %v512_v41 }
 0x207   : > { %v480_v44 = vpop.xlane.xlu1 %479 }
 0x208   : > { %v515_v45 = vadd.f32 %v514_v43, %v480_v44 }
 0x20a   : > { %v516_v46 = vsel %vm505_vm4, %v515_v45, -inf }
 0x20b   : > { %v517_v47 = vrot.slane %v516_v46, 4 }
 0x20d   : > { %v518_v48 = vmax.f32 %v516_v46, %v517_v47 }
 0x20f   : > { %v519_v49 = vrot.slane %v518_v48, 2 }
 0x211   : > { %v520_v50 = vmax.f32 %v518_v48, %v519_v49 }
 0x213   : > { %v521_v51 = vrot.slane %v520_v50, 1 }
 0x215   : > { %v522_v52 = vmax.f32 %v520_v50, %v521_v51 }
 0x217   : > { %v523_v53 = vsub.f32 %v515_v45, %v522_v52 }
 0x219   : > { %v524_v54 = vmul.f32 1.442695, %v523_v53 }
 0x21b   : > { %1050 = vpow2.f32 %v524_v54 }
 0x225   : > { %v1051_v55 = vpop.eup %1050 }
 0x226   : > { %v526_v56 = vsel %vm505_vm4, %v1051_v55, 0.0  ;;  %535 = vperm.xlu1 %1042, %v1051_v55  }
 0x227   : > { %v527_v59 = vrot.slane %v526_v56, 4 }
 0x229   : > { %v528_v61 = vadd.f32 %v527_v59, %v526_v56 }
 0x22b   : > { %v529_v62 = vrot.slane %v528_v61, 2 }
 0x22d   : > { %v530_v63 = vadd.f32 %v529_v62, %v528_v61 }
 0x22f   : > { %v531_v7 = vrot.slane %v530_v63, 1 }
 0x231   : > { %v532_v8 = vadd.f32 %v531_v7, %v530_v63 }
 0x233   : > { %1052 = vrcp.f32 %v532_v8 }
 0x23d   : > { %v1053_v12 = vpop.eup %1052 }
 0x23e   : > { %549 = vperm.xlu0 %1043, %v1053_v12  }
 0x2a5   : > { %v536_v13 = vpop.permute.xlu1 %535 }
 0x2a6   : > { %v538_v14 = vmul.f32 %v536_v13, %v1554_v16 }
 0x2a8   : > { %v539_v15 = vsel %vm383_vm1, %v538_v14, 0.0 }
 0x2a9   : > { %v540_v17 = vrot.slane %v539_v15, 4 }
 0x2ab   : > { %v541_v1 = vadd.f32 %v540_v17, %v539_v15 }
 0x2ad   : > { %v542_v18 = vrot.slane %v541_v1, 2 }
 0x2af   : > { %v543_v0 = vadd.f32 %v542_v18, %v541_v1 }
 0x2b1   : > { %v544_v19 = vrot.slane %v543_v0, 1 }
 0x2b3   : > { %v545_v20 = vadd.f32 %v544_v19, %v543_v0 }
 0x2bd   : > { %v550_v21 = vpop.permute.xlu0 %549 }
 0x2be   : > { %v552_v22 = vmul.f32 %v550_v21, %v545_v20 }
 0x2c0   : > { %931 = vmatmul.mubr.msk.f32.vlgmr.msra.gmra.mrb[0].mxu1 %vm383_vm1, %v552_v22 }
 0x393   : > { %v728_v4 = vpop.f32.mrb[0].mxu1 }
 0x394   : > { %1054 = vtanh.f32 %v728_v4  ;;  %v932_v23 = vpop.f32.mrb[1].mxu1 }
 0x39e   : > { %v1055_v16 = vpop.eup %1054 }
 0x39f   : > { %734 = vst.msk [vmem:[%s374_s18] sm:$0x1] %vm733_vm5, %v1055_v16 }
 0x3a0   : > { %1183 = shalt.err (!%p1180_p0)
}
 0x3a1   : > { %s1184_s27 = scalar_lea.hbm %s1595_s14, 16  ;;  %s1188_s17 = scalar_lea.hbm %s1647_s8, 32 }
 0x3a2   : > { %p1185_p9 = scmp.ne.s32.totalorder %s1595_s14, %s1184_s27  ;;  %p1189_p13 = scmp.lt.u32.totalorder %s1595_s14, %s1647_s8 }
 0x3a3   : > { %p1190_p6 = scmp.lt.u32.totalorder %s1188_s17, %s1184_s27  ;;  %p1192_p3 = scmp.lt.u32.totalorder %s1184_s27, %s1595_s14 }
 0x3a4   : > { %p1186_p11 = pnand %p1185_p9, %p1456_p5 }
 0x3a5   : > { %p1191_p10 = por %p1190_p6, %p1189_p13 }
 0x3a6   : > { %p1187_p8 = pneg %p1186_p11 }
 0x3a7   : > { %p1193_p7 = por %p1192_p3, %p1191_p10 }
 0x3a9   : > { %p1194_p12 = pnand %p1193_p7, %p1187_p8 }
 0x3ab   : > { %1197 = shalt.err (!%p1194_p12)
}
 0x3ac   : > { %973 = dma.vmem_to_hbm [thread:$0]  (%p1456_p5), %s1597_s19, 16, %s1595_s14, %s736_s16  }
 0x3ad PF: > { %s1671_s18 = sld [smem:[#allocation15_spill]]  ;;  %s1672_s24 = sld [smem:[#allocation16_spill]] }
 0x3ae   : > { %p1674_p2 = scmp.ge.s32.totalorder %s1244_s30, 2 }
 0x3b3   : > { %s760_s21 = sand.u32 1, %s1671_s18   ;;  %p1673_p1 = scmp.ne.s32.totalorder %s1672_s24, 0 }
 0x3b4   : > { %s761_s12 = scalar_lea.sflag [#allocation4], %s760_s21 }
 0x3b5   : > { %p990_p4 = pnand %p1674_p2, %p1673_p1 }
 0x3b7   : > { %1227 = dma.done.wait (!%p990_p4), %s761_s12, 16  }
 0x3b8   : > { %1229 = vsyncadd (!%p990_p4), %s761_s12, 4294967280  ;;  %p23_p0 = scmp.ge.s32.totalorder %s1442_s26, 4   ;;  %s1675_s27 = smov %s1236_s28 }
 0x3b9   : > { %s1676_s28 = smov %s1240_s29  ;;  %s1677_s29 = smov %s1452_s22 }
 0x3ba   : > { %s1678_s30 = smov %s1442_s26  ;;  %25 = sbr.rel (!%p23_p0) target bundleno = 7 (0x7), region = 112 }
 0x3c1   :  { %765 = vsyncpa [#allocation3], 1 }
 0x3c2   :  { %767 = vsyncpa [#allocation3 + $0x1], 1 }
 0x3c3   :  { %768 = vsyncpa [#allocation6], 1 }
 0x3c4   :  { %769 = vsyncpa [#allocation9], 1 }
 0x3c5   :  { %770 = vsyncpa [#allocation4], 1 }
 0x3c6   :  { %772 = vsyncpa [#allocation4 + $0x1], 1 }

</bundles_post_ra>
